<compile_context>
chip_gen: v7x
topology: tpu7x:2x2x1
jax: 0.10.0
libtpu: 0.0.40
codegen_flags: <defaults>
</compile_context>

<pallas_src>
import functools

import jax
import jax.numpy as jnp
from jax.experimental import pallas as pl
from jax.experimental.pallas import tpu as pltpu


def dws_conv_kernel(x_ref, weff_ref, beff_ref, o_ref, *, kh, kw, w):
    # x_ref:    (C_in, L)   flattened (b, h, w [+lane pad]) image tile
    # weff_ref: (KH*KW, C_out, C_in)  folded depthwise*pointwise weights
    # beff_ref: (C_out, 1)  folded bias (pw @ dw_bias + pw_bias), f32
    l = x_ref.shape[1]
    x = x_ref[...]  # native dtype straight into the MXU (bf16 stays bf16)

    # Folded depthwise-separable conv: one accumulating MXU matmul per tap
    # over a rolled copy of the image.  result[k] needs x[k + i*W + j], and
    # roll(x, (L - off) % L)[k] == x[(k + off) % L]; wrapped / cross-image
    # positions only ever land on rows/cols that the wrapper crops away.
    acc = jnp.dot(weff_ref[0], x, preferred_element_type=jnp.float32)
    for i in range(kh):
        for j in range(kw):
            if i == 0 and j == 0:
                continue
            off = i * w + j
            rolled = pltpu.roll(x, shift=(l - off) % l, axis=1)   # XLU slot
            acc = acc + jnp.dot(weff_ref[i * kw + j], rolled,
                                preferred_element_type=jnp.float32)

    out = acc + beff_ref[...].astype(jnp.float32)   # folded (dw + pw) bias
    o_ref[...] = out.astype(o_ref.dtype)            # lane-dense, unmasked store


def _round_up(x, m):
    return ((x + m - 1) // m) * m


def _per_image_vmem_bytes(c_in, c_out, lp, itemsize):
    """Per-image VMEM usage: double-buffered in/out pipeline blocks plus the
    in-kernel temporaries (x view + one rolled copy + f32 accumulator), with
    channel counts sublane-padded to multiples of 8."""
    c_in_p = _round_up(c_in, 8)
    c_out_p = _round_up(c_out, 8)
    pipeline = 2 * (c_in_p * itemsize + c_out_p * itemsize) * lp
    temps = (2 * c_in_p * itemsize + c_out_p * 4) * lp
    return pipeline + temps


def _tpu_budget():
    """Return (vmem_capacity_bytes, prefer_multi_step).

    prefer_multi_step is True only on chips with 2 TensorCores per chip (v7x),
    where >=2 grid steps let the 'parallel' batch axis shard across cores.
    Single-TC chips (v5e/v6e) take one big block instead."""
    vmem_cap = 64 * 1024 * 1024          # conservative default (v7x per-TC VMEM)
    try:
        vmem_cap = int(pltpu.get_tpu_info().vmem_capacity_bytes)
    except Exception:
        pass
    prefer_multi = False
    try:
        kind = jax.devices()[0].device_kind.lower()
        prefer_multi = ("v7" in kind) or ("7x" in kind)
    except Exception:
        pass
    return vmem_cap, prefer_multi


def _pick_b_tile(n, per_image_bytes, vmem_budget, prefer_multi_step):
    """Largest batch-tile divisor of n that fits the VMEM budget.  On 2-TC
    chips prefer >=2 grid steps so both cores get work."""
    max_fit = max(1, vmem_budget // max(per_image_bytes, 1))
    divisors = [d for d in range(1, n + 1) if n % d == 0 and d <= max_fit]
    if not divisors:
        return 1
    if prefer_multi_step:
        multi = [d for d in divisors if n // d >= 2]
        if multi:
            return max(multi)
    return max(divisors)


def dws_conv(x, dw_weight, dw_bias, pw_weight, pw_bias, *, b_tile=None):
    """x: (N, C_in, H, W); dw_weight: (C_in, 1, KH, KW); dw_bias: (C_in,);
    pw_weight: (C_out, C_in, 1, 1); pw_bias: (C_out,).  Returns NCHW output."""
    n, c_in, h, w = x.shape
    c_out = pw_weight.shape[0]
    kh, kw = dw_weight.shape[2], dw_weight.shape[3]
    h_out, w_out = h - kh + 1, w - kw + 1

    hw = h * w
    lp = ((hw + 127) // 128) * 128       # per-image flattened length, lane-aligned

    # Layout plumbing (XLA): NCHW -> (C_in, N, H*W) -> lane-pad -> (C_in, N*Lp).
    # TODO(synk): for stacked DWSConv layers, keep this channel-major flattened
    # layout across layers to avoid one extra HBM round trip per layer.
    x_t = jnp.transpose(x, (1, 0, 2, 3)).reshape(c_in, n, hw)
    if lp != hw:
        x_t = jnp.pad(x_t, ((0, 0), (0, 0), (0, lp - hw)))
    x_flat = x_t.reshape(c_in, n * lp)

    # Fold depthwise taps + bias into the pointwise conv (computed in f32):
    #   W_eff[tap, co, ci] = pw[co, ci] * dw[ci, tap]
    #   b_eff[co]          = sum_ci pw[co, ci] * dw_bias[ci] + pw_bias[co]
    dww = dw_weight.reshape(c_in, kh * kw).astype(jnp.float32)
    pww = pw_weight.reshape(c_out, c_in).astype(jnp.float32)
    weff = (pww[None, :, :] * dww.T[:, None, :]).astype(x.dtype)   # (KH*KW, C_out, C_in)
    beff = (pww @ dw_bias.astype(jnp.float32).reshape(c_in, 1)
            + pw_bias.astype(jnp.float32).reshape(c_out, 1))       # (C_out, 1), f32

    itemsize = x.dtype.itemsize
    vmem_cap, prefer_multi = _tpu_budget()
    vmem_limit = max(32 * 1024 * 1024, vmem_cap - 16 * 1024 * 1024)
    if b_tile is None:
        b_tile = _pick_b_tile(
            n,
            per_image_bytes=_per_image_vmem_bytes(c_in, c_out, lp, itemsize),
            vmem_budget=int(vmem_limit * 0.8),
            prefer_multi_step=prefer_multi)
    assert n % b_tile == 0
    grid = (n // b_tile,)
    block_l = b_tile * lp                # multiple of 128 -> (8,128) rule satisfied

    flops = 2 * c_out * c_in * kh * kw * n * lp
    bytes_accessed = ((x_flat.size + c_out * n * lp) * itemsize
                      + weff.size * itemsize + beff.size * 4)

    kern = functools.partial(dws_conv_kernel, kh=kh, kw=kw, w=w)

    out_flat = pl.pallas_call(
        kern,
        out_shape=jax.ShapeDtypeStruct((c_out, n * lp), x.dtype),
        grid_spec=pltpu.PrefetchScalarGridSpec(
            num_scalar_prefetch=0,
            grid=grid,
            in_specs=[
                pl.BlockSpec((c_in, block_l), lambda b: (0, b)),
                pl.BlockSpec((kh * kw, c_out, c_in), lambda b: (0, 0, 0)),
                pl.BlockSpec((c_out, 1), lambda b: (0, 0)),
            ],
            out_specs=pl.BlockSpec((c_out, block_l), lambda b: (0, b)),
        ),
        compiler_params=pltpu.CompilerParams(
            dimension_semantics=("parallel",),
            vmem_limit_bytes=int(vmem_limit)),
        cost_estimate=pl.CostEstimate(flops=int(flops), transcendentals=0,
                                      bytes_accessed=int(bytes_accessed)),
    )(x_flat, weff, beff)

    # Crop the lane padding + the conv halo, transpose back to NCHW (XLA).
    out = out_flat.reshape(c_out, n, lp)[:, :, :hw].reshape(c_out, n, h, w)
    out = jnp.transpose(out, (1, 0, 2, 3))[:, :, :h_out, :w_out]
    return out


def dws_conv_ref(x, dw_weight, dw_bias, pw_weight, pw_bias):
    """Pure-JAX reference matching torch Conv2d semantics (VALID, stride 1)."""
    dn = ("NCHW", "OIHW", "NCHW")
    y = jax.lax.conv_general_dilated(
        x, dw_weight, window_strides=(1, 1), padding="VALID",
        dimension_numbers=dn, feature_group_count=x.shape[1])
    y = y + dw_bias[None, :, None, None]
    z = jax.lax.conv_general_dilated(
        y, pw_weight, window_strides=(1, 1), padding="VALID",
        dimension_numbers=dn)
    z = z + pw_bias[None, :, None, None]
    return z


if __name__ == "__main__":
    # Shapes consistent with DWSConv(in_channels=4, out_channels=8, kernel_size=3)
    N, C_IN, H, W = 2, 4, 16, 16
    C_OUT, K = 8, 3

    key = jax.random.PRNGKey(0)
    kx, k1, k2, k3, k4 = jax.random.split(key, 5)

    x = jax.random.normal(kx, (N, C_IN, H, W), dtype=jnp.float32)

    # Deterministic, PyTorch-shaped parameters (Conv2d weight layouts).
    dw_weight = 0.2 * jax.random.normal(k1, (C_IN, 1, K, K), dtype=jnp.float32)
    dw_bias = 0.1 * jax.random.normal(k2, (C_IN,), dtype=jnp.float32)
    pw_weight = 0.2 * jax.random.normal(k3, (C_OUT, C_IN, 1, 1), dtype=jnp.float32)
    pw_bias = 0.1 * jax.random.normal(k4, (C_OUT,), dtype=jnp.float32)

    out = dws_conv(x, dw_weight, dw_bias, pw_weight, pw_bias)
    out = jax.block_until_ready(out)

    ref = dws_conv_ref(x, dw_weight, dw_bias, pw_weight, pw_bias)
    ref = jax.block_until_ready(ref)

    assert out.shape == (N, C_OUT, H - K + 1, W - K + 1), out.shape
    if not jnp.allclose(out, ref, atol=1e-4, rtol=1e-4):
        raise AssertionError("Pallas DWSConv does not match reference")

    print("KERNEL_OK")
</pallas_src>

<mosaic_0001>
module attributes {stable_mosaic.version = 11 : i64} {
  func.func @dws_conv_kernel(%arg0: i32, %arg1: memref<4x512xf32, #tpu.memory_space<vmem>>, %arg2: memref<9x8x4xf32, #tpu.memory_space<vmem>>, %arg3: memref<8x1xf32, #tpu.memory_space<vmem>>, %arg4: memref<8x512xf32, #tpu.memory_space<vmem>>) attributes {dimension_semantics = [#tpu.dimension_semantics<parallel>], iteration_bounds = array<i64: 1>, scalar_prefetch = 0 : i64, scratch_operands = 0 : i64, tpu.core_type = #tpu.core_type<tc>, window_params = [{transform_indices = @transform_0, window_bounds = array<i64: 4, 512>}, {pipeline_mode = #tpu.pipeline_mode<synchronous>, transform_indices = @transform_1, window_bounds = array<i64: 9, 8, 4>}, {pipeline_mode = #tpu.pipeline_mode<synchronous>, transform_indices = @transform_2, window_bounds = array<i64: 8, 1>}, {transform_indices = @transform_3, window_bounds = array<i64: 8, 512>}]} {
    %c0 = arith.constant 0 : index
    %c0_0 = arith.constant 0 : index
    %0 = vector.load %arg1[%c0, %c0_0] : memref<4x512xf32, #tpu.memory_space<vmem>>, vector<4x512xf32>
    %c0_1 = arith.constant 0 : index
    %c0_2 = arith.constant 0 : index
    %c0_3 = arith.constant 0 : index
    %1 = vector.load %arg2[%c0_1, %c0_2, %c0_3] : memref<9x8x4xf32, #tpu.memory_space<vmem>>, vector<1x8x4xf32>
    %2 = vector.shape_cast %1 : vector<1x8x4xf32> to vector<8x4xf32>
    %cst = arith.constant dense<0.000000e+00> : vector<8x512xf32>
    %3 = tpu.matmul %2, %0, %cst {dimension_numbers = #tpu.dot_dimension_numbers<[1], [0], [0], [1], [0, 0, 1, 1], [], []>} : vector<8x4xf32>, vector<4x512xf32>, vector<8x512xf32> -> vector<8x512xf32>
    %c511_i32 = arith.constant 511 : i32
    %4 = tpu.dynamic_rotate %0 by %c511_i32 dim 1 : vector<4x512xf32>, i32 -> vector<4x512xf32>
    %c1 = arith.constant 1 : index
    %c0_4 = arith.constant 0 : index
    %c0_5 = arith.constant 0 : index
    %5 = vector.load %arg2[%c1, %c0_4, %c0_5] : memref<9x8x4xf32, #tpu.memory_space<vmem>>, vector<1x8x4xf32>
    %6 = vector.shape_cast %5 : vector<1x8x4xf32> to vector<8x4xf32>
    %cst_6 = arith.constant dense<0.000000e+00> : vector<8x512xf32>
    %7 = tpu.matmul %6, %4, %cst_6 {dimension_numbers = #tpu.dot_dimension_numbers<[1], [0], [0], [1], [0, 0, 1, 1], [], []>} : vector<8x4xf32>, vector<4x512xf32>, vector<8x512xf32> -> vector<8x512xf32>
    %8 = arith.addf %3, %7 : vector<8x512xf32>
    %c510_i32 = arith.constant 510 : i32
    %9 = tpu.dynamic_rotate %0 by %c510_i32 dim 1 : vector<4x512xf32>, i32 -> vector<4x512xf32>
    %c2 = arith.constant 2 : index
    %c0_7 = arith.constant 0 : index
    %c0_8 = arith.constant 0 : index
    %10 = vector.load %arg2[%c2, %c0_7, %c0_8] : memref<9x8x4xf32, #tpu.memory_space<vmem>>, vector<1x8x4xf32>
    %11 = vector.shape_cast %10 : vector<1x8x4xf32> to vector<8x4xf32>
    %cst_9 = arith.constant dense<0.000000e+00> : vector<8x512xf32>
    %12 = tpu.matmul %11, %9, %cst_9 {dimension_numbers = #tpu.dot_dimension_numbers<[1], [0], [0], [1], [0, 0, 1, 1], [], []>} : vector<8x4xf32>, vector<4x512xf32>, vector<8x512xf32> -> vector<8x512xf32>
    %13 = arith.addf %8, %12 : vector<8x512xf32>
    %c496_i32 = arith.constant 496 : i32
    %14 = tpu.dynamic_rotate %0 by %c496_i32 dim 1 : vector<4x512xf32>, i32 -> vector<4x512xf32>
    %c3 = arith.constant 3 : index
    %c0_10 = arith.constant 0 : index
    %c0_11 = arith.constant 0 : index
    %15 = vector.load %arg2[%c3, %c0_10, %c0_11] : memref<9x8x4xf32, #tpu.memory_space<vmem>>, vector<1x8x4xf32>
    %16 = vector.shape_cast %15 : vector<1x8x4xf32> to vector<8x4xf32>
    %cst_12 = arith.constant dense<0.000000e+00> : vector<8x512xf32>
    %17 = tpu.matmul %16, %14, %cst_12 {dimension_numbers = #tpu.dot_dimension_numbers<[1], [0], [0], [1], [0, 0, 1, 1], [], []>} : vector<8x4xf32>, vector<4x512xf32>, vector<8x512xf32> -> vector<8x512xf32>
    %18 = arith.addf %13, %17 : vector<8x512xf32>
    %c495_i32 = arith.constant 495 : i32
    %19 = tpu.dynamic_rotate %0 by %c495_i32 dim 1 : vector<4x512xf32>, i32 -> vector<4x512xf32>
    %c4 = arith.constant 4 : index
    %c0_13 = arith.constant 0 : index
    %c0_14 = arith.constant 0 : index
    %20 = vector.load %arg2[%c4, %c0_13, %c0_14] : memref<9x8x4xf32, #tpu.memory_space<vmem>>, vector<1x8x4xf32>
    %21 = vector.shape_cast %20 : vector<1x8x4xf32> to vector<8x4xf32>
    %cst_15 = arith.constant dense<0.000000e+00> : vector<8x512xf32>
    %22 = tpu.matmul %21, %19, %cst_15 {dimension_numbers = #tpu.dot_dimension_numbers<[1], [0], [0], [1], [0, 0, 1, 1], [], []>} : vector<8x4xf32>, vector<4x512xf32>, vector<8x512xf32> -> vector<8x512xf32>
    %23 = arith.addf %18, %22 : vector<8x512xf32>
    %c494_i32 = arith.constant 494 : i32
    %24 = tpu.dynamic_rotate %0 by %c494_i32 dim 1 : vector<4x512xf32>, i32 -> vector<4x512xf32>
    %c5 = arith.constant 5 : index
    %c0_16 = arith.constant 0 : index
    %c0_17 = arith.constant 0 : index
    %25 = vector.load %arg2[%c5, %c0_16, %c0_17] : memref<9x8x4xf32, #tpu.memory_space<vmem>>, vector<1x8x4xf32>
    %26 = vector.shape_cast %25 : vector<1x8x4xf32> to vector<8x4xf32>
    %cst_18 = arith.constant dense<0.000000e+00> : vector<8x512xf32>
    %27 = tpu.matmul %26, %24, %cst_18 {dimension_numbers = #tpu.dot_dimension_numbers<[1], [0], [0], [1], [0, 0, 1, 1], [], []>} : vector<8x4xf32>, vector<4x512xf32>, vector<8x512xf32> -> vector<8x512xf32>
    %28 = arith.addf %23, %27 : vector<8x512xf32>
    %c480_i32 = arith.constant 480 : i32
    %29 = tpu.dynamic_rotate %0 by %c480_i32 dim 1 : vector<4x512xf32>, i32 -> vector<4x512xf32>
    %c6 = arith.constant 6 : index
    %c0_19 = arith.constant 0 : index
    %c0_20 = arith.constant 0 : index
    %30 = vector.load %arg2[%c6, %c0_19, %c0_20] : memref<9x8x4xf32, #tpu.memory_space<vmem>>, vector<1x8x4xf32>
    %31 = vector.shape_cast %30 : vector<1x8x4xf32> to vector<8x4xf32>
    %cst_21 = arith.constant dense<0.000000e+00> : vector<8x512xf32>
    %32 = tpu.matmul %31, %29, %cst_21 {dimension_numbers = #tpu.dot_dimension_numbers<[1], [0], [0], [1], [0, 0, 1, 1], [], []>} : vector<8x4xf32>, vector<4x512xf32>, vector<8x512xf32> -> vector<8x512xf32>
    %33 = arith.addf %28, %32 : vector<8x512xf32>
    %c479_i32 = arith.constant 479 : i32
    %34 = tpu.dynamic_rotate %0 by %c479_i32 dim 1 : vector<4x512xf32>, i32 -> vector<4x512xf32>
    %c7 = arith.constant 7 : index
    %c0_22 = arith.constant 0 : index
    %c0_23 = arith.constant 0 : index
    %35 = vector.load %arg2[%c7, %c0_22, %c0_23] : memref<9x8x4xf32, #tpu.memory_space<vmem>>, vector<1x8x4xf32>
    %36 = vector.shape_cast %35 : vector<1x8x4xf32> to vector<8x4xf32>
    %cst_24 = arith.constant dense<0.000000e+00> : vector<8x512xf32>
    %37 = tpu.matmul %36, %34, %cst_24 {dimension_numbers = #tpu.dot_dimension_numbers<[1], [0], [0], [1], [0, 0, 1, 1], [], []>} : vector<8x4xf32>, vector<4x512xf32>, vector<8x512xf32> -> vector<8x512xf32>
    %38 = arith.addf %33, %37 : vector<8x512xf32>
    %c478_i32 = arith.constant 478 : i32
    %39 = tpu.dynamic_rotate %0 by %c478_i32 dim 1 : vector<4x512xf32>, i32 -> vector<4x512xf32>
    %c8 = arith.constant 8 : index
    %c0_25 = arith.constant 0 : index
    %c0_26 = arith.constant 0 : index
    %40 = vector.load %arg2[%c8, %c0_25, %c0_26] : memref<9x8x4xf32, #tpu.memory_space<vmem>>, vector<1x8x4xf32>
    %41 = vector.shape_cast %40 : vector<1x8x4xf32> to vector<8x4xf32>
    %cst_27 = arith.constant dense<0.000000e+00> : vector<8x512xf32>
    %42 = tpu.matmul %41, %39, %cst_27 {dimension_numbers = #tpu.dot_dimension_numbers<[1], [0], [0], [1], [0, 0, 1, 1], [], []>} : vector<8x4xf32>, vector<4x512xf32>, vector<8x512xf32> -> vector<8x512xf32>
    %43 = arith.addf %38, %42 : vector<8x512xf32>
    %c0_28 = arith.constant 0 : index
    %c0_29 = arith.constant 0 : index
    %44 = vector.load %arg3[%c0_28, %c0_29] : memref<8x1xf32, #tpu.memory_space<vmem>>, vector<8x1xf32>
    %45 = vector.broadcast %44 : vector<8x1xf32> to vector<8x512xf32>
    %46 = arith.addf %43, %45 : vector<8x512xf32>
    %c0_30 = arith.constant 0 : index
    %c0_31 = arith.constant 0 : index
    %47 = vector.load %arg4[%c0_30, %c0_31] : memref<8x512xf32, #tpu.memory_space<vmem>>, vector<8x512xf32>
    tpu.vector_store %arg4[%c0_30, %c0_31], %46 {strides = array<i32>} : memref<8x512xf32, #tpu.memory_space<vmem>>, vector<8x512xf32>,
    return
  }
  func.func @transform_0(%arg0: i32) -> (i32, i32) {
    %c0_i32 = arith.constant 0 : i32
    %c0_i32_0 = arith.constant 0 : i32
    return %c0_i32, %arg0 : i32, i32
  }
  func.func @transform_1(%arg0: i32) -> (i32, i32, i32) {
    %c0_i32 = arith.constant 0 : i32
    %c0_i32_0 = arith.constant 0 : i32
    %c0_i32_1 = arith.constant 0 : i32
    %c0_i32_2 = arith.constant 0 : i32
    return %c0_i32, %c0_i32_0, %c0_i32_1 : i32, i32, i32
  }
  func.func @transform_2(%arg0: i32) -> (i32, i32) {
    %c0_i32 = arith.constant 0 : i32
    %c0_i32_0 = arith.constant 0 : i32
    %c0_i32_1 = arith.constant 0 : i32
    return %c0_i32, %c0_i32_0 : i32, i32
  }
  func.func @transform_3(%arg0: i32) -> (i32, i32) {
    %c0_i32 = arith.constant 0 : i32
    %c0_i32_0 = arith.constant 0 : i32
    return %c0_i32, %arg0 : i32, i32
  }
}

</mosaic_0001>

<bundles_post_ra>
// kernel: tpu_custom_call.1
= control target key start
LH: loop header
LB: loop body
LE: loop exit
PB: predicated region body
PF: predicated region fallthrough
CT: control target
= control target key end

     0   :  { %s1745_s16 = smov 127   ;;  %v1746_v4 = vmov 0.0   ;;  %s1954_s0 = inlined_call_operand.vmem [shape: f32[4,512], index: 0, kind: input, shape index: {}]   ;;  %s1955_s1 = inlined_call_operand.vmem [shape: f32[9,8,4], index: 1, kind: input, shape index: {}]   ;;  %s1956_s2 = inlined_call_operand.vmem [shape: f32[8,1], index: 2, kind: input, shape index: {}]   ;;  %s1957_s3 = inlined_call_operand.hbm [shape: f32[8,512], index: 3, kind: output, shape index: {}]  }
   0x1   :  { %v1779_v0 = vld [vmem:[%s1954_s0 + $0x8] sm:$0xff]  ;;  %v1784_v1 = vld [vmem:[%s1954_s0] sm:$0xff]  ;;  %122 = vmatprep.mubr.f32.mxu0 %v1746_v4  ;;  %193 = vmatprep.mubr.f32.mxu1 %v1746_v4 }
   0x2   :  { %28 = vrot.lane.b32.xlu1 %v1779_v0, %s1745_s16  ;;  %24 = vrot.lane.b32.xlu0 %v1784_v1, %s1745_s16  ;;  %v1790_v2 = vcombine.high %v1779_v0, %v1779_v0  ;;  %v1794_v3 = vcombine.high %v1784_v1, %v1784_v1 }
   0x3   :  { %8 = vsyncpa [#allocation3], 0  ;;  %s1747_s0 = smov 126   ;;  %s1748_s17 = smov 112   ;;  %v1754_v5 = vmov 0   ;;  %v1585_v6 = vld [vmem:[%s1956_s2] sm:$0xff]  ;;  %v32_v7 = vlaneseq }
   0x4   :  { %s1749_s18 = smov 111   ;;  %s1750_s19 = smov 110   ;;  %1718 = vset.pattern.permute.xlu0 %v1754_v5  ;;  %vm45_vm1 = vcmask 1043456   ;;  %vm41_vm2 = vcmask 31744   ;;  %v1613_v17 = vld [vmem:[%s1955_s1 + $0x8] sm:$0xff]  ;;  %v17_v24 = vld [vmem:[%s1955_s1] sm:$0xff] }
   0x5   :  { %s1751_s20 = smov 96   ;;  %s1752_s21 = smov 95   ;;  %v1831_v8 = vand.u32 127, %v32_v7  ;;  %v1626_v33 = vld [vmem:[%s1955_s1 + $0x10] sm:$0xff]  ;;  %v1633_v42 = vld [vmem:[%s1955_s1 + $0x18] sm:$0xff]  ;;  %v1640_v51 = vld [vmem:[%s1955_s1 + $0x20] sm:$0xff] }
   0x6   :  { %30 = vrot.lane.b32.xlu1 %v1790_v2, %s1745_s16  ;;  %26 = vrot.lane.b32.xlu0 %v1794_v3, %s1745_s16  ;;  %s1753_s22 = smov 94   ;;  %v1647_v60 = vld [vmem:[%s1955_s1 + $0x28] sm:$0xff]  ;;  %s1755_s15 = smov [#allocation2]  }
   0x7   :  { %vm34_vm0 = vcmp.lt.s32.totalorder %v1831_v8, 127  ;;  %vm361_vm3 = vcmp.lt.s32.totalorder %v1831_v8, 126  ;;  %vm537_vm4 = vcmp.lt.s32.totalorder %v1831_v8, 112  ;;  %vm713_vm5 = vcmp.lt.s32.totalorder %v1831_v8, 111  ;;  %s1605_s16 = sshll.u32 %s1755_s15, 4  ;;  %s1606_s16 = int_to_ptr.vmem [resolvable:$true] %s1605_s16 }
   0x8   :  { %vm889_vm6 = vcmp.lt.s32.totalorder %v1831_v8, 110  ;;  %vm1065_vm7 = vcmp.lt.s32.totalorder %v1831_v8, 96  ;;  %vm1241_vm8 = vcmp.lt.s32.totalorder %v1831_v8, 95  ;;  %vm1417_vm9 = vcmp.lt.s32.totalorder %v1831_v8, 94  ;;  %v1668_v8 = vld [vmem:[%s1955_s1 + $0x40] sm:$0xff]  ;;  %p1726_p1 = scmp.lt.s32.totalorder %s1606_s16, %s1606_s16 }
   0xa   :  { %355 = vrot.lane.b32.xlu1 %v1794_v3, %s1747_s0  ;;  %353 = vrot.lane.b32.xlu0 %v1784_v1, %s1747_s0 }
   0xe   :  { %359 = vrot.lane.b32.xlu1 %v1790_v2, %s1747_s0  ;;  %357 = vrot.lane.b32.xlu0 %v1779_v0, %s1747_s0 }
  0x12   :  { %531 = vrot.lane.b32.xlu1 %v1794_v3, %s1748_s17  ;;  %529 = vrot.lane.b32.xlu0 %v1784_v1, %s1748_s17 }
  0x16   :  { %535 = vrot.lane.b32.xlu1 %v1790_v2, %s1748_s17  ;;  %533 = vrot.lane.b32.xlu0 %v1779_v0, %s1748_s17 }
  0x1a   :  { %707 = vrot.lane.b32.xlu1 %v1794_v3, %s1749_s18  ;;  %705 = vrot.lane.b32.xlu0 %v1784_v1, %s1749_s18 }
  0x1e   :  { %711 = vrot.lane.b32.xlu1 %v1790_v2, %s1749_s18  ;;  %709 = vrot.lane.b32.xlu0 %v1779_v0, %s1749_s18 }
  0x22   :  { %883 = vrot.lane.b32.xlu1 %v1794_v3, %s1750_s19  ;;  %881 = vrot.lane.b32.xlu0 %v1784_v1, %s1750_s19 }
  0x26   :  { %887 = vrot.lane.b32.xlu1 %v1790_v2, %s1750_s19  ;;  %885 = vrot.lane.b32.xlu0 %v1779_v0, %s1750_s19 }
  0x2a   :  { %1059 = vrot.lane.b32.xlu1 %v1794_v3, %s1751_s20  ;;  %1057 = vrot.lane.b32.xlu0 %v1784_v1, %s1751_s20 }
  0x2e   :  { %1063 = vrot.lane.b32.xlu1 %v1790_v2, %s1751_s20  ;;  %1061 = vrot.lane.b32.xlu0 %v1779_v0, %s1751_s20 }
  0x32   :  { %1235 = vrot.lane.b32.xlu1 %v1794_v3, %s1752_s21  ;;  %1233 = vrot.lane.b32.xlu0 %v1784_v1, %s1752_s21 }
  0x36   :  { %1239 = vrot.lane.b32.xlu1 %v1790_v2, %s1752_s21  ;;  %1237 = vrot.lane.b32.xlu0 %v1779_v0, %s1752_s21 }
  0x3a   :  { %1411 = vrot.lane.b32.xlu1 %v1794_v3, %s1753_s22  ;;  %1409 = vrot.lane.b32.xlu0 %v1784_v1, %s1753_s22 }
  0x3e   :  { %1415 = vrot.lane.b32.xlu1 %v1790_v2, %s1753_s22  ;;  %1413 = vrot.lane.b32.xlu0 %v1779_v0, %s1753_s22 }
  0x42   :  { %1588 = vperm.xlu0 %1718, %v1585_v6   ;;  %v1654_v6 = vld [vmem:[%s1955_s1 + $0x30] sm:$0xff] }
  0x74   :  { %v29_v9 = vpop.permute.xlu1 %28  ;;  %v25_v10 = vpop.permute.xlu0 %24 }
  0x78   :  { %v31_v11 = vpop.permute.xlu1 %30  ;;  %v27_v12 = vpop.permute.xlu0 %26 }
  0x79   :  { %v36_v13 = vsel %vm34_vm0, %v27_v12, %v29_v9  ;;  %v38_v14 = vsel %vm34_vm0, %v31_v11, %v25_v10  ;;  %v37_v15 = vsel %vm34_vm0, %v25_v10, %v27_v12  ;;  %v35_v16 = vsel %vm34_vm0, %v29_v9, %v31_v11 }
  0x7a   :  { %1614 = vmatprep.subr.msk.mxu0 %vm45_vm1, %v36_v13  ;;  %1617 = vmatprep.subr.msk.mxu1 %vm45_vm1, %v38_v14 }
  0x7b   :  { %1615 = vmatpush1.msk.msra.mxu0 %vm45_vm1, %v37_v15  ;;  %1618 = vmatpush1.msk.msra.mxu1 %vm45_vm1, %v35_v16  ;;  %v1661_v16 = vld [vmem:[%s1955_s1 + $0x38] sm:$0xff]  ;;  %s1721_s1 = scalar_lea.vmem %s1606_s16, 512 }
  0x7c   :  { %1619 = vmatmul.mubr.msk.f32.vlgmr.msra.gmra.mrb[0].mxu1 %vm41_vm2, %v1613_v17  ;;  %1623 = vmatprep.subr.msk.mxu1 %vm45_vm1, %v1790_v2  ;;  %v356_v18 = vpop.permute.xlu1 %355  ;;  %v354_v19 = vpop.permute.xlu0 %353  ;;  %p1722_p0 = scmp.ne.s32.totalorder %s1606_s16, %s1721_s1  ;;  %p1727_p2 = scmp.lt.s32.totalorder %s1721_s1, %s1721_s1 }
  0x7d   :  { %1616 = vmatmul.mubr.msk.f32.vlgmr.msra.gmra.mrb[0].mxu0 %vm41_vm2, %v1613_v17  ;;  %1620 = vmatprep.subr.msk.mxu0 %vm45_vm1, %v1794_v3  ;;  %v364_v26 = vsel %vm361_vm3, %v354_v19, %v356_v18 }
  0x7e   :  { %1621 = vmatpush1.msk.msra.mxu0 %vm45_vm1, %v1784_v1  ;;  %1624 = vmatpush1.msk.msra.mxu1 %vm45_vm1, %v1779_v0  ;;  %p1728_p3 = por %p1727_p2, %p1726_p1 }
  0x7f   :  { %275 = vmatprep.mubr.f32.mxu0 %v1746_v4  ;;  %346 = vmatprep.mubr.f32.mxu1 %v1746_v4 }
  0x80   :  { %v360_v20 = vpop.permute.xlu1 %359  ;;  %v358_v21 = vpop.permute.xlu0 %357  ;;  %p1729_p4 = pnand %p1728_p3, %p1722_p0 }
  0x81   :  { %v365_v22 = vsel %vm361_vm3, %v360_v20, %v354_v19  ;;  %v363_v23 = vsel %vm361_vm3, %v356_v18, %v358_v21  ;;  %v362_v25 = vsel %vm361_vm3, %v358_v21, %v360_v20 }
  0x82   :  { %1627 = vmatprep.subr.msk.mxu0 %vm45_vm1, %v363_v23  ;;  %1630 = vmatprep.subr.msk.mxu1 %vm45_vm1, %v365_v22 }
  0x84   :  { %1625 = vmatmul.mubr.msk.f32.vlgmr.msra.gmra.mrb[0].mxu1 %vm41_vm2, %v17_v24  ;;  %v532_v27 = vpop.permute.xlu1 %531  ;;  %v530_v28 = vpop.permute.xlu0 %529 }
  0x85   :  { %1622 = vmatmul.mubr.msk.f32.vlgmr.msra.gmra.mrb[0].mxu0 %vm41_vm2, %v17_v24  ;;  %1631 = vmatpush1.msk.msra.mxu1 %vm45_vm1, %v362_v25  ;;  %v540_v35 = vsel %vm537_vm4, %v530_v28, %v532_v27 }
  0x86   :  { %1628 = vmatpush1.msk.msra.mxu0 %vm45_vm1, %v364_v26  ;;  %447 = vmatprep.mubr.f32.mxu0 %v1746_v4 }
  0x87   :  { %518 = vmatprep.mubr.f32.mxu1 %v1746_v4 }
  0x88   :  { %v536_v29 = vpop.permute.xlu1 %535  ;;  %v534_v30 = vpop.permute.xlu0 %533 }
  0x89   :  { %v541_v31 = vsel %vm537_vm4, %v536_v29, %v530_v28  ;;  %v539_v32 = vsel %vm537_vm4, %v532_v27, %v534_v30  ;;  %v538_v34 = vsel %vm537_vm4, %v534_v30, %v536_v29 }
  0x8a   :  { %1634 = vmatprep.subr.msk.mxu0 %vm45_vm1, %v539_v32  ;;  %1637 = vmatprep.subr.msk.mxu1 %vm45_vm1, %v541_v31 }
  0x8c   :  { %v708_v36 = vpop.permute.xlu1 %707  ;;  %1632 = vmatmul.mubr.msk.f32.vlgmr.msra.gmra.mrb[0].mxu1 %vm41_vm2, %v1626_v33  ;;  %v706_v37 = vpop.permute.xlu0 %705 }
  0x8d   :  { %1629 = vmatmul.mubr.msk.f32.vlgmr.msra.gmra.mrb[0].mxu0 %vm41_vm2, %v1626_v33  ;;  %1638 = vmatpush1.msk.msra.mxu1 %vm45_vm1, %v538_v34  ;;  %v716_v44 = vsel %vm713_vm5, %v706_v37, %v708_v36 }
  0x8e   :  { %1635 = vmatpush1.msk.msra.mxu0 %vm45_vm1, %v540_v35  ;;  %623 = vmatprep.mubr.f32.mxu0 %v1746_v4 }
  0x8f   :  { %694 = vmatprep.mubr.f32.mxu1 %v1746_v4 }
  0x90   :  { %v712_v38 = vpop.permute.xlu1 %711  ;;  %v710_v39 = vpop.permute.xlu0 %709 }
  0x91   :  { %v717_v40 = vsel %vm713_vm5, %v712_v38, %v706_v37  ;;  %v715_v41 = vsel %vm713_vm5, %v708_v36, %v710_v39  ;;  %v714_v43 = vsel %vm713_vm5, %v710_v39, %v712_v38 }
  0x92   :  { %1641 = vmatprep.subr.msk.mxu0 %vm45_vm1, %v715_v41  ;;  %1644 = vmatprep.subr.msk.mxu1 %vm45_vm1, %v717_v40 }
  0x94   :  { %v884_v45 = vpop.permute.xlu1 %883  ;;  %1639 = vmatmul.mubr.msk.f32.vlgmr.msra.gmra.mrb[0].mxu1 %vm41_vm2, %v1633_v42  ;;  %v882_v46 = vpop.permute.xlu0 %881 }
  0x95   :  { %1636 = vmatmul.mubr.msk.f32.vlgmr.msra.gmra.mrb[0].mxu0 %vm41_vm2, %v1633_v42  ;;  %1645 = vmatpush1.msk.msra.mxu1 %vm45_vm1, %v714_v43  ;;  %v892_v53 = vsel %vm889_vm6, %v882_v46, %v884_v45 }
  0x96   :  { %1642 = vmatpush1.msk.msra.mxu0 %vm45_vm1, %v716_v44  ;;  %799 = vmatprep.mubr.f32.mxu0 %v1746_v4 }
  0x97   :  { %870 = vmatprep.mubr.f32.mxu1 %v1746_v4 }
  0x98   :  { %v888_v47 = vpop.permute.xlu1 %887  ;;  %v886_v48 = vpop.permute.xlu0 %885 }
  0x99   :  { %v893_v49 = vsel %vm889_vm6, %v888_v47, %v882_v46  ;;  %v891_v50 = vsel %vm889_vm6, %v884_v45, %v886_v48  ;;  %v890_v52 = vsel %vm889_vm6, %v886_v48, %v888_v47 }
  0x9a   :  { %1648 = vmatprep.subr.msk.mxu0 %vm45_vm1, %v891_v50  ;;  %1651 = vmatprep.subr.msk.mxu1 %vm45_vm1, %v893_v49 }
  0x9c   :  { %v1060_v54 = vpop.permute.xlu1 %1059  ;;  %1646 = vmatmul.mubr.msk.f32.vlgmr.msra.gmra.mrb[0].mxu1 %vm41_vm2, %v1640_v51  ;;  %v1058_v55 = vpop.permute.xlu0 %1057 }
  0x9d   :  { %1643 = vmatmul.mubr.msk.f32.vlgmr.msra.gmra.mrb[0].mxu0 %vm41_vm2, %v1640_v51  ;;  %1652 = vmatpush1.msk.msra.mxu1 %vm45_vm1, %v890_v52  ;;  %v1068_v62 = vsel %vm1065_vm7, %v1058_v55, %v1060_v54 }
  0x9e   :  { %1649 = vmatpush1.msk.msra.mxu0 %vm45_vm1, %v892_v53  ;;  %975 = vmatprep.mubr.f32.mxu0 %v1746_v4 }
  0x9f   :  { %1046 = vmatprep.mubr.f32.mxu1 %v1746_v4 }
  0xa0   :  { %v1064_v56 = vpop.permute.xlu1 %1063  ;;  %v1062_v57 = vpop.permute.xlu0 %1061 }
  0xa1   :  { %v1069_v58 = vsel %vm1065_vm7, %v1064_v56, %v1058_v55  ;;  %v1067_v59 = vsel %vm1065_vm7, %v1060_v54, %v1062_v57  ;;  %v1066_v61 = vsel %vm1065_vm7, %v1062_v57, %v1064_v56 }
  0xa2   :  { %1655 = vmatprep.subr.msk.mxu0 %vm45_vm1, %v1067_v59  ;;  %1658 = vmatprep.subr.msk.mxu1 %vm45_vm1, %v1069_v58 }
  0xa4   :  { %v1236_v63 = vpop.permute.xlu1 %1235  ;;  %1653 = vmatmul.mubr.msk.f32.vlgmr.msra.gmra.mrb[0].mxu1 %vm41_vm2, %v1647_v60  ;;  %v1234_v0 = vpop.permute.xlu0 %1233 }
  0xa5   :  { %1650 = vmatmul.mubr.msk.f32.vlgmr.msra.gmra.mrb[0].mxu0 %vm41_vm2, %v1647_v60  ;;  %1659 = vmatpush1.msk.msra.mxu1 %vm45_vm1, %v1066_v61  ;;  %v1244_v9 = vsel %vm1241_vm8, %v1234_v0, %v1236_v63 }
  0xa6   :  { %1656 = vmatpush1.msk.msra.mxu0 %vm45_vm1, %v1068_v62  ;;  %1151 = vmatprep.mubr.f32.mxu0 %v1746_v4 }
  0xa7   :  { %1222 = vmatprep.mubr.f32.mxu1 %v1746_v4 }
  0xa8   :  { %v1240_v1 = vpop.permute.xlu1 %1239  ;;  %v1238_v2 = vpop.permute.xlu0 %1237 }
  0xa9   :  { %v1245_v3 = vsel %vm1241_vm8, %v1240_v1, %v1234_v0  ;;  %v1243_v5 = vsel %vm1241_vm8, %v1236_v63, %v1238_v2  ;;  %v1242_v7 = vsel %vm1241_vm8, %v1238_v2, %v1240_v1 }
  0xaa   :  { %1662 = vmatprep.subr.msk.mxu0 %vm45_vm1, %v1243_v5  ;;  %1665 = vmatprep.subr.msk.mxu1 %vm45_vm1, %v1245_v3 }
  0xac   :  { %v1412_v10 = vpop.permute.xlu1 %1411  ;;  %1660 = vmatmul.mubr.msk.f32.vlgmr.msra.gmra.mrb[0].mxu1 %vm41_vm2, %v1654_v6  ;;  %v1410_v11 = vpop.permute.xlu0 %1409 }
  0xad   :  { %1657 = vmatmul.mubr.msk.f32.vlgmr.msra.gmra.mrb[0].mxu0 %vm41_vm2, %v1654_v6  ;;  %1666 = vmatpush1.msk.msra.mxu1 %vm45_vm1, %v1242_v7  ;;  %v1420_v18 = vsel %vm1417_vm9, %v1410_v11, %v1412_v10 }
  0xae   :  { %1663 = vmatpush1.msk.msra.mxu0 %vm45_vm1, %v1244_v9  ;;  %1327 = vmatprep.mubr.f32.mxu0 %v1746_v4 }
  0xaf   :  { %1398 = vmatprep.mubr.f32.mxu1 %v1746_v4 }
  0xb0   :  { %v1416_v12 = vpop.permute.xlu1 %1415  ;;  %v1414_v13 = vpop.permute.xlu0 %1413 }
  0xb1   :  { %v1421_v14 = vsel %vm1417_vm9, %v1416_v12, %v1410_v11  ;;  %v1419_v15 = vsel %vm1417_vm9, %v1412_v10, %v1414_v13  ;;  %v1418_v17 = vsel %vm1417_vm9, %v1414_v13, %v1416_v12 }
  0xb2   :  { %1669 = vmatprep.subr.msk.mxu0 %vm45_vm1, %v1419_v15  ;;  %1672 = vmatprep.subr.msk.mxu1 %vm45_vm1, %v1421_v14 }
  0xb4   :  { %1667 = vmatmul.mubr.msk.f32.vlgmr.msra.gmra.mrb[0].mxu1 %vm41_vm2, %v1661_v16 }
  0xb5   :  { %1664 = vmatmul.mubr.msk.f32.vlgmr.msra.gmra.mrb[0].mxu0 %vm41_vm2, %v1661_v16  ;;  %1673 = vmatpush1.msk.msra.mxu1 %vm45_vm1, %v1418_v17 }
  0xb6   :  { %1670 = vmatpush1.msk.msra.mxu0 %vm45_vm1, %v1420_v18  ;;  %1503 = vmatprep.mubr.f32.mxu0 %v1746_v4 }
  0xb7   :  { %1574 = vmatprep.mubr.f32.mxu1 %v1746_v4 }
  0xbc   :  { %1674 = vmatmul.mubr.msk.f32.vlgmr.msra.gmra.mrb[0].mxu1 %vm41_vm2, %v1668_v8 }
  0xbd   :  { %1671 = vmatmul.mubr.msk.f32.vlgmr.msra.gmra.mrb[0].mxu0 %vm41_vm2, %v1668_v8 }
  0xc1   :  { %v1589_v19 = vpop.permute.xlu0 %1588 }
 0x18f   :  { %v1576_v20 = vpop.f32.mrb[0].mxu1 }
 0x190   :  { %v1505_v21 = vpop.f32.mrb[0].mxu0  ;;  %v1593_v22 = vadd.f32 %v1589_v19, %v1576_v20  ;;  %v1578_v23 = vpop.f32.mrb[1].mxu1 }
 0x191   :  { %v1591_v24 = vadd.f32 %v1589_v19, %v1505_v21  ;;  %v1507_v25 = vpop.f32.mrb[1].mxu0  ;;  %v1594_v26 = vadd.f32 %v1589_v19, %v1578_v23 }
 0x192   :  { %1597 = vst [vmem:[#allocation2 + $0x10] sm:$0xff] %v1593_v22  ;;  %v1592_v4 = vadd.f32 %v1589_v19, %v1507_v25 }
 0x193   :  { %1595 = vst [vmem:[#allocation2] sm:$0xff] %v1591_v24  ;;  %1598 = vst [vmem:[#allocation2 + $0x18] sm:$0xff] %v1594_v26 }
 0x194   :  { %1596 = vst [vmem:[#allocation2 + $0x8] sm:$0xff] %v1592_v4 }
 0x195   :  { %1732 = shalt.err (!%p1729_p4)
}
 0x196   :  { %s1733_s18 = scalar_lea.hbm %s1957_s3, 512 }
 0x197   :  { %p1734_p5 = scmp.ne.s32.totalorder %s1957_s3, %s1733_s18  ;;  %p1737_p6 = scmp.lt.u32.totalorder %s1733_s18, %s1957_s3 }
 0x199   :  { %p1739_p7 = pnand %p1737_p6, %p1734_p5 }
 0x19b   :  { %1742 = shalt.err (!%p1739_p7)
}
 0x19c   :  { %1608 = dma.vmem_to_hbm [thread:$0]  %s1606_s16, 512, %s1957_s3, [#allocation3]  }
 0x19d   :  { %1743 = dma.done.wait [#allocation3], 512  }
 0x19e   :  { %1744 = vsyncadd [#allocation3], 4294966784 }
 0x19f   :  { %1612 = vsyncpa [#allocation3], 1 }

</bundles_post_ra>
